<compile_context>
chip_gen: v7x
topology: tpu7x:2x2x1
jax: 0.10.0
libtpu: 0.0.40
codegen_flags: <defaults>
</compile_context>

<pallas_src>
import jax
import jax.numpy as jnp
from jax import lax
from jax.experimental import pallas as pl
from jax.experimental.pallas import tpu as pltpu

_LN_EPS = 1e-5                      # torch.nn.LayerNorm default eps
_INV_SQRT2 = 0.7071067811865476
_SQRT_2_OVER_PI = 0.7978845608028654


def _round_up(n, m):
    return ((n + m - 1) // m) * m


def _default_tile_m():
    """Generation-aware default row tile."""
    try:
        kind = jax.devices()[0].device_kind.lower()
    except Exception:
        kind = ""
    if "v6" in kind:
        return 512   # 128 MiB VMEM + 2x256^2 MXU: long rows amortize per-step overhead
    if "v5" in kind:
        return 256   # MXU-bound sooner, 1 vst slot, no bf16 VPU: keep tiles modest
    return 256       # v7x (64 MiB VMEM per TC) and unknown chips: conservative


def _buffered_blockspec_supported():
    """Feature probe: does this JAX build accept pipeline_mode=pl.Buffered(1)?"""
    if not hasattr(pl, "Buffered"):
        return False
    try:
        pl.BlockSpec((8, 128), lambda i: (0, 0), pipeline_mode=pl.Buffered(1))
        return True
    except Exception:
        return False


def _make_prenorm_ffn_kernel(n_chunks, approx_gelu):
    def kernel(x_ref, g_ref, beta_ref, w1_ref, b1_ref, w2_ref, b2_ref, o_ref):
        # x_ref: (TM, D) f32 | g/beta/b2: (1, D) f32 | w1: (C, D, HC) bf16
        # b1: (C, 1, HC) f32 | w2: (C, HC, D) bf16   | o_ref: (TM, D) f32
        tm, D = x_ref.shape
        x = x_ref[...].astype(jnp.float32)

        # --- LayerNorm over the feature dim (f32, biased variance, eps inside rsqrt) ---
        mean = jnp.mean(x, axis=-1, keepdims=True)
        xc = x - mean
        var = jnp.mean(xc * xc, axis=-1, keepdims=True)
        xn = (xc * lax.rsqrt(var + _LN_EPS) * g_ref[...] + beta_ref[...]
              ).astype(jnp.bfloat16)

        # --- Hidden-dim chunked Linear1 -> GELU -> Linear2 accumulate ---
        def chunk_body(j, acc):
            # (TM, D) @ (D, HC) on the MXU, bf16 operands, f32 accumulation, + bias.
            h = jnp.dot(xn, w1_ref[j], preferred_element_type=jnp.float32) + b1_ref[j]
            if approx_gelu:
                # tanh GELU: transcendental goes to the EUP slot (cheaper than erf-poly
                # on the VALU). Deviates ~1e-3 from torch.nn.GELU's exact erf default.
                h = 0.5 * h * (1.0 + jnp.tanh(_SQRT_2_OVER_PI *
                                              (h + 0.044715 * h * h * h)))
            else:
                # Exact erf GELU (torch.nn.GELU default).
                h = 0.5 * h * (1.0 + lax.erf(h * _INV_SQRT2))
            # (TM, HC) @ (HC, D) on the MXU; post-GELU activation cast straight to bf16.
            return acc + jnp.dot(h.astype(jnp.bfloat16), w2_ref[j],
                                 preferred_element_type=jnp.float32)

        acc = lax.fori_loop(0, n_chunks, chunk_body,
                            jnp.zeros((tm, D), jnp.float32), unroll=True)
        o_ref[...] = (acc + b2_ref[...]).astype(o_ref.dtype)

    return kernel


def prenorm_feedforward(x, gamma, beta, w1, b1, w2, b2, *,
                        tile_m=None, approx_gelu=False):
    """PreNorm(dim, FeedForward): LayerNorm over last dim, then Linear->GELU->Linear.

    x: (B, S, D) f32; gamma/beta: (D,); w1: (D, H); b1: (H,); w2: (H, D); b2: (D,).
    Returns (B, S, D) f32.
    """
    B, S, D = x.shape
    H = w1.shape[1]
    assert D % 128 == 0 and H % 128 == 0, "feature dims must be multiples of 128 (lanes)"

    N = B * S
    x2 = x.reshape(N, D)

    # ---- row-tile selection (no padding; ragged tail handled by masked edge stores) ----
    tm_cap = int(tile_m) if tile_m is not None else _default_tile_m()
    if N >= 16:
        # keep >= 2 grid steps so the 'parallel' row axis can shard across the two v7x TCs
        tm_cap = min(tm_cap, _round_up(pl.cdiv(N, 2), 8))
    tm = max(8, min(tm_cap, _round_up(N, 8)))
    grid = (pl.cdiv(N, tm),)

    # ---- hidden-dim chunking ----
    if H <= 512:
        h_chunk = H
    elif H % 512 == 0:
        h_chunk = 512
    elif H % 256 == 0:
        h_chunk = 256
    else:
        h_chunk = 128
    n_chunks = H // h_chunk

    # bf16 weights: half the VMEM residency & HBM bytes, 2x MXU rate; accumulation stays
    # f32. Chunked (leading-axis) layouts make per-chunk access a cheap first-axis index.
    w1c = w1.astype(jnp.bfloat16).reshape(D, n_chunks, h_chunk).transpose(1, 0, 2)
    w2c = w2.astype(jnp.bfloat16).reshape(n_chunks, h_chunk, D)
    b1c = b1.astype(jnp.float32).reshape(n_chunks, 1, h_chunk)
    g2 = gamma.reshape(1, D).astype(jnp.float32)
    be2 = beta.reshape(1, D).astype(jnp.float32)
    b2_2 = b2.reshape(1, D).astype(jnp.float32)

    # ---- VMEM budget: real footprint + headroom, capped below physical VMEM ----
    need = (4 * tm * D * 4                 # x + out row tiles (double-buffered), f32
            + 2 * (D * H + H * D)          # bf16 W1 + W2 (single-buffered, resident)
            + (3 * D + H) * 4              # gamma, beta, b1, b2
            + tm * D * 2                   # xn bf16
            + tm * D * 4                   # f32 output accumulator
            + tm * h_chunk * 6)            # per-chunk h (f32) + bf16 cast
    try:
        phys_vmem = int(pltpu.get_tpu_info().vmem_capacity_bytes)
    except Exception:
        phys_vmem = 64 << 20               # assume the tightest budget (v7x) if unknown
    cap = max(phys_vmem - (8 << 20), 32 << 20)   # always leave compiler/pipeline headroom
    vmem_limit = int(min(max(int(1.25 * need), 32 << 20), cap))

    cost = pl.CostEstimate(
        flops=int(4 * N * D * H + 12 * N * D),       # 2 matmuls + LN/GELU elementwise
        transcendentals=int(N * H + N),              # erf per hidden element + rsqrt
        bytes_accessed=int(2 * N * D * 4 + 2 * (D * H + H * D) + (3 * D + H) * 4),
    )

    kernel = _make_prenorm_ffn_kernel(n_chunks, approx_gelu)

    def run(single_buffer_weights):
        def const_spec(shape):
            idx = lambda i, _n=len(shape): (0,) * _n
            if single_buffer_weights:
                # Block never changes across the row grid -> one resident VMEM buffer
                # (default double-buffering would double the weight footprint for nothing).
                return pl.BlockSpec(shape, idx, pipeline_mode=pl.Buffered(1))
            return pl.BlockSpec(shape, idx)

        grid_spec = pltpu.PrefetchScalarGridSpec(
            num_scalar_prefetch=0,
            grid=grid,
            in_specs=[
                pl.BlockSpec((tm, D), lambda i: (i, 0)),      # x row tile (pipelined)
                const_spec((1, D)),                           # LN gamma
                const_spec((1, D)),                           # LN beta
                const_spec((n_chunks, D, h_chunk)),           # W1 chunks (resident)
                const_spec((n_chunks, 1, h_chunk)),           # b1 chunks
                const_spec((n_chunks, h_chunk, D)),           # W2 chunks (resident)
                const_spec((1, D)),                           # b2
            ],
            out_specs=pl.BlockSpec((tm, D), lambda i: (i, 0)),
        )
        return pl.pallas_call(
            kernel,
            out_shape=jax.ShapeDtypeStruct((N, D), x.dtype),
            grid_spec=grid_spec,
            compiler_params=pltpu.CompilerParams(
                dimension_semantics=("parallel",),    # row tiles split across TCs (v7x)
                vmem_limit_bytes=vmem_limit),
            cost_estimate=cost,
        )(x2, g2, be2, w1c, b1c, w2c, b2_2)

    if _buffered_blockspec_supported():
        try:
            out2 = run(single_buffer_weights=True)
        except (NotImplementedError, ValueError, pltpu.LoweringException):
            # This Mosaic build rejects pipeline_mode=Buffered(1): retry with default
            # buffering only; identical vmem_limit, everything else unchanged.
            out2 = run(single_buffer_weights=False)
    else:
        out2 = run(single_buffer_weights=False)

    return out2.reshape(B, S, D)


def init_params(key, dim, hidden_dim):
    # Deterministic params: LN affine near identity; PyTorch-Linear-like uniform for W/b.
    k1, k2, k3, k4, k5, k6 = jax.random.split(key, 6)
    lim1 = 1.0 / jnp.sqrt(dim)
    lim2 = 1.0 / jnp.sqrt(hidden_dim)
    gamma = 1.0 + 0.1 * jax.random.normal(k1, (dim,), jnp.float32)
    beta = 0.1 * jax.random.normal(k2, (dim,), jnp.float32)
    w1 = jax.random.uniform(k3, (dim, hidden_dim), jnp.float32, -lim1, lim1)
    b1 = jax.random.uniform(k4, (hidden_dim,), jnp.float32, -lim1, lim1)
    w2 = jax.random.uniform(k5, (hidden_dim, dim), jnp.float32, -lim2, lim2)
    b2 = jax.random.uniform(k6, (dim,), jnp.float32, -lim2, lim2)
    return gamma, beta, w1, b1, w2, b2


if __name__ == "__main__":
    B, S, DIM, HIDDEN = 2, 8, 128, 256   # small, lane-aligned ViT-ish shapes

    key = jax.random.PRNGKey(0)
    kx, kp = jax.random.split(key)
    x = jax.random.normal(kx, (B, S, DIM), jnp.float32)
    gamma, beta, w1, b1, w2, b2 = init_params(kp, DIM, HIDDEN)

    out = prenorm_feedforward(x, gamma, beta, w1, b1, w2, b2)
    out = jax.block_until_ready(out)

    # Plain-JAX reference: LayerNorm (eps=1e-5) -> Linear -> exact-erf GELU -> Linear.
    xr = x.reshape(-1, DIM)
    mu = xr.mean(-1, keepdims=True)
    var = ((xr - mu) ** 2).mean(-1, keepdims=True)
    xn = (xr - mu) / jnp.sqrt(var + _LN_EPS) * gamma + beta
    h = xn @ w1 + b1
    h = 0.5 * h * (1.0 + lax.erf(h / jnp.sqrt(2.0)))
    ref = (h @ w2 + b2).reshape(B, S, DIM)

    # bf16 MXU operands with f32 accumulation -> slightly looser tolerance than pure f32.
    assert jnp.allclose(out, ref, atol=2e-2, rtol=2e-2), "mismatch vs reference"

    print("KERNEL_OK")
</pallas_src>

<mosaic_0001>
module attributes {stable_mosaic.version = 11 : i64} {
  func.func @kernel(%arg0: i32, %arg1: memref<8x128xf32, #tpu.memory_space<vmem>>, %arg2: memref<1x128xf32, #tpu.memory_space<vmem>>, %arg3: memref<1x128xf32, #tpu.memory_space<vmem>>, %arg4: memref<1x128x256xbf16, #tpu.memory_space<vmem>>, %arg5: memref<1x1x256xf32, #tpu.memory_space<vmem>>, %arg6: memref<1x256x128xbf16, #tpu.memory_space<vmem>>, %arg7: memref<1x128xf32, #tpu.memory_space<vmem>>, %arg8: memref<8x128xf32, #tpu.memory_space<vmem>>) attributes {dimension_semantics = [#tpu.dimension_semantics<parallel>], iteration_bounds = array<i64: 2>, scalar_prefetch = 0 : i64, scratch_operands = 0 : i64, tpu.core_type = #tpu.core_type<tc>, window_params = [{transform_indices = @transform_0, window_bounds = array<i64: 8, 128>}, {pipeline_mode = #tpu.pipeline_mode<synchronous>, transform_indices = @transform_1, window_bounds = array<i64: 1, 128>}, {pipeline_mode = #tpu.pipeline_mode<synchronous>, transform_indices = @transform_2, window_bounds = array<i64: 1, 128>}, {pipeline_mode = #tpu.pipeline_mode<synchronous>, transform_indices = @transform_3, window_bounds = array<i64: 1, 128, 256>}, {pipeline_mode = #tpu.pipeline_mode<synchronous>, transform_indices = @transform_4, window_bounds = array<i64: 1, 1, 256>}, {pipeline_mode = #tpu.pipeline_mode<synchronous>, transform_indices = @transform_5, window_bounds = array<i64: 1, 256, 128>}, {pipeline_mode = #tpu.pipeline_mode<synchronous>, transform_indices = @transform_6, window_bounds = array<i64: 1, 128>}, {transform_indices = @transform_7, window_bounds = array<i64: 8, 128>}]} {
    %c0 = arith.constant 0 : index
    %c0_0 = arith.constant 0 : index
    %0 = vector.load %arg1[%c0, %c0_0] : memref<8x128xf32, #tpu.memory_space<vmem>>, vector<8x128xf32>
    %cst = arith.constant dense<0.000000e+00> : vector<8xf32>
    %1 = vector.multi_reduction <add>, %0, %cst [1] : vector<8x128xf32> to vector<8xf32>
    %2 = vector.shape_cast %1 : vector<8xf32> to vector<8x1xf32>
    %cst_1 = arith.constant 1.280000e+02 : f32
    %3 = vector.broadcast %cst_1 : f32 to vector<8x1xf32>
    %4 = arith.divf %2, %3 : vector<8x1xf32>
    %5 = vector.broadcast %4 : vector<8x1xf32> to vector<8x128xf32>
    %6 = arith.subf %0, %5 : vector<8x128xf32>
    %7 = arith.mulf %6, %6 : vector<8x128xf32>
    %cst_2 = arith.constant dense<0.000000e+00> : vector<8xf32>
    %8 = vector.multi_reduction <add>, %7, %cst_2 [1] : vector<8x128xf32> to vector<8xf32>
    %9 = vector.shape_cast %8 : vector<8xf32> to vector<8x1xf32>
    %cst_3 = arith.constant 1.280000e+02 : f32
    %10 = vector.broadcast %cst_3 : f32 to vector<8x1xf32>
    %11 = arith.divf %9, %10 : vector<8x1xf32>
    %cst_4 = arith.constant 9.99999974E-6 : f32
    %12 = vector.broadcast %cst_4 : f32 to vector<8x1xf32>
    %13 = arith.addf %11, %12 : vector<8x1xf32>
    %14 = math.rsqrt %13 : vector<8x1xf32>
    %15 = vector.broadcast %14 : vector<8x1xf32> to vector<8x128xf32>
    %16 = arith.mulf %6, %15 : vector<8x128xf32>
    %c0_5 = arith.constant 0 : index
    %c0_6 = arith.constant 0 : index
    %17 = vector.load %arg2[%c0_5, %c0_6] : memref<1x128xf32, #tpu.memory_space<vmem>>, vector<1x128xf32>
    %18 = vector.broadcast %17 : vector<1x128xf32> to vector<8x128xf32>
    %19 = arith.mulf %16, %18 : vector<8x128xf32>
    %c0_7 = arith.constant 0 : index
    %c0_8 = arith.constant 0 : index
    %20 = vector.load %arg3[%c0_7, %c0_8] : memref<1x128xf32, #tpu.memory_space<vmem>>, vector<1x128xf32>
    %21 = vector.broadcast %20 : vector<1x128xf32> to vector<8x128xf32>
    %22 = arith.addf %19, %21 : vector<8x128xf32>
    %23 = arith.truncf %22 : vector<8x128xf32> to vector<8x128xbf16>
    %cst_9 = arith.constant 0.000000e+00 : f32
    %24 = vector.broadcast %cst_9 : f32 to vector<8x128xf32>
    %c0_i32 = arith.constant 0 : i32
    %25 = arith.index_cast %c0_i32 : i32 to index
    %c0_10 = arith.constant 0 : index
    %c0_11 = arith.constant 0 : index
    %26 = vector.load %arg4[%25, %c0_10, %c0_11] : memref<1x128x256xbf16, #tpu.memory_space<vmem>>, vector<1x128x256xbf16>
    %27 = vector.shape_cast %26 : vector<1x128x256xbf16> to vector<128x256xbf16>
    %cst_12 = arith.constant dense<0.000000e+00> : vector<8x256xf32>
    %28 = tpu.matmul %23, %27, %cst_12 {dimension_numbers = #tpu.dot_dimension_numbers<[1], [0], [0], [1], [0, 0, 1, 1], [], []>} : vector<8x128xbf16>, vector<128x256xbf16>, vector<8x256xf32> -> vector<8x256xf32>
    %29 = arith.index_cast %c0_i32 : i32 to index
    %c0_13 = arith.constant 0 : index
    %c0_14 = arith.constant 0 : index
    %30 = vector.load %arg5[%29, %c0_13, %c0_14] : memref<1x1x256xf32, #tpu.memory_space<vmem>>, vector<1x1x256xf32>
    %31 = vector.shape_cast %30 : vector<1x1x256xf32> to vector<1x256xf32>
    %32 = vector.broadcast %31 : vector<1x256xf32> to vector<8x256xf32>
    %33 = arith.addf %28, %32 : vector<8x256xf32>
    %cst_15 = arith.constant 5.000000e-01 : f32
    %34 = vector.broadcast %cst_15 : f32 to vector<8x256xf32>
    %35 = arith.mulf %34, %33 : vector<8x256xf32>
    %cst_16 = arith.constant 0.707106769 : f32
    %36 = vector.broadcast %cst_16 : f32 to vector<8x256xf32>
    %37 = arith.mulf %33, %36 : vector<8x256xf32>
    %38 = math.erf %37 : vector<8x256xf32>
    %cst_17 = arith.constant 1.000000e+00 : f32
    %39 = vector.broadcast %cst_17 : f32 to vector<8x256xf32>
    %40 = arith.addf %39, %38 : vector<8x256xf32>
    %41 = arith.mulf %35, %40 : vector<8x256xf32>
    %42 = arith.truncf %41 : vector<8x256xf32> to vector<8x256xbf16>
    %43 = arith.index_cast %c0_i32 : i32 to index
    %c0_18 = arith.constant 0 : index
    %c0_19 = arith.constant 0 : index
    %44 = vector.load %arg6[%43, %c0_18, %c0_19] : memref<1x256x128xbf16, #tpu.memory_space<vmem>>, vector<1x256x128xbf16>
    %45 = vector.shape_cast %44 : vector<1x256x128xbf16> to vector<256x128xbf16>
    %cst_20 = arith.constant dense<0.000000e+00> : vector<8x128xf32>
    %46 = tpu.matmul %42, %45, %cst_20 {dimension_numbers = #tpu.dot_dimension_numbers<[1], [0], [0], [1], [0, 0, 1, 1], [], []>} : vector<8x256xbf16>, vector<256x128xbf16>, vector<8x128xf32> -> vector<8x128xf32>
    %47 = arith.addf %24, %46 : vector<8x128xf32>
    %c1_i32 = arith.constant 1 : i32
    %c0_21 = arith.constant 0 : index
    %c0_22 = arith.constant 0 : index
    %48 = vector.load %arg7[%c0_21, %c0_22] : memref<1x128xf32, #tpu.memory_space<vmem>>, vector<1x128xf32>
    %49 = vector.broadcast %48 : vector<1x128xf32> to vector<8x128xf32>
    %50 = arith.addf %47, %49 : vector<8x128xf32>
    %c0_23 = arith.constant 0 : index
    %c0_24 = arith.constant 0 : index
    %51 = vector.load %arg8[%c0_23, %c0_24] : memref<8x128xf32, #tpu.memory_space<vmem>>, vector<8x128xf32>
    tpu.vector_store %arg8[%c0_23, %c0_24], %50 {strides = array<i32>} : memref<8x128xf32, #tpu.memory_space<vmem>>, vector<8x128xf32>,
    return
  }
  func.func @transform_0(%arg0: i32) -> (i32, i32) {
    %c0_i32 = arith.constant 0 : i32
    %c0_i32_0 = arith.constant 0 : i32
    return %arg0, %c0_i32 : i32, i32
  }
  func.func @transform_1(%arg0: i32) -> (i32, i32) {
    %c0_i32 = arith.constant 0 : i32
    %c0_i32_0 = arith.constant 0 : i32
    %c0_i32_1 = arith.constant 0 : i32
    return %c0_i32, %c0_i32_0 : i32, i32
  }
  func.func @transform_2(%arg0: i32) -> (i32, i32) {
    %c0_i32 = arith.constant 0 : i32
    %c0_i32_0 = arith.constant 0 : i32
    %c0_i32_1 = arith.constant 0 : i32
    return %c0_i32, %c0_i32_0 : i32, i32
  }
  func.func @transform_3(%arg0: i32) -> (i32, i32, i32) {
    %c0_i32 = arith.constant 0 : i32
    %c0_i32_0 = arith.constant 0 : i32
    %c0_i32_1 = arith.constant 0 : i32
    %c0_i32_2 = arith.constant 0 : i32
    return %c0_i32, %c0_i32_0, %c0_i32_1 : i32, i32, i32
  }
  func.func @transform_4(%arg0: i32) -> (i32, i32, i32) {
    %c0_i32 = arith.constant 0 : i32
    %c0_i32_0 = arith.constant 0 : i32
    %c0_i32_1 = arith.constant 0 : i32
    %c0_i32_2 = arith.constant 0 : i32
    return %c0_i32, %c0_i32_0, %c0_i32_1 : i32, i32, i32
  }
  func.func @transform_5(%arg0: i32) -> (i32, i32, i32) {
    %c0_i32 = arith.constant 0 : i32
    %c0_i32_0 = arith.constant 0 : i32
    %c0_i32_1 = arith.constant 0 : i32
    %c0_i32_2 = arith.constant 0 : i32
    return %c0_i32, %c0_i32_0, %c0_i32_1 : i32, i32, i32
  }
  func.func @transform_6(%arg0: i32) -> (i32, i32) {
    %c0_i32 = arith.constant 0 : i32
    %c0_i32_0 = arith.constant 0 : i32
    %c0_i32_1 = arith.constant 0 : i32
    return %c0_i32, %c0_i32_0 : i32, i32
  }
  func.func @transform_7(%arg0: i32) -> (i32, i32) {
    %c0_i32 = arith.constant 0 : i32
    %c0_i32_0 = arith.constant 0 : i32
    return %arg0, %c0_i32 : i32, i32
  }
}

</mosaic_0001>

<bundles_post_ra>
// kernel: tpu_custom_call.1
= control target key start
LH: loop header
LB: loop body
LE: loop exit
PB: predicated region body
PF: predicated region fallthrough
CT: control target
= control target key end

     0   :  { %12 = vsyncpa [#allocation3], 0  ;;  %s1437_s0 = inlined_call_operand.hbm [shape: f32[16,128], index: 0, kind: input, shape index: {}]   ;;  %s1438_s1 = inlined_call_operand.vmem [shape: f32[1,128], index: 1, kind: input, shape index: {}]   ;;  %s1439_s2 = inlined_call_operand.vmem [shape: f32[1,128], index: 2, kind: input, shape index: {}]   ;;  %s1440_s3 = inlined_call_operand.hbm [shape: bf16[1,128,256], index: 3, kind: input, shape index: {}]   ;;  %s1441_s4 = inlined_call_operand.vmem [shape: f32[1,1,256], index: 4, kind: input, shape index: {}]   ;;  %s1442_s5 = inlined_call_operand.hbm [shape: bf16[1,256,128], index: 5, kind: input, shape index: {}]   ;;  %s1443_s6 = inlined_call_operand.vmem [shape: f32[1,128], index: 6, kind: input, shape index: {}]   ;;  %s1444_s7 = inlined_call_operand.hbm [shape: f32[16,128], index: 7, kind: output, shape index: {}]  }
   0x1   :  { %14 = vsyncpa [#allocation3 + $0x1], 0 }
   0x2   :  { %15 = vsyncpa [#allocation6], 0 }
   0x3   :  { %16 = vsyncpa [#allocation4], 0 }
   0x4   :  { %18 = vsyncpa [#allocation4 + $0x1], 0  ;;  %s1192_s24 = smov 0   ;;  %s1194_s25 = smov 0  }
   0x5   :  { %s1196_s26 = smov 0   ;;  %s1198_s27 = smov 0  }
   0x6 LB: > { %s1213_s28 = sadd.s32 4294967295, %s1141_s27   ;;  %s794_s29 = sadd.s32 4294967294, %s1141_s27   ;;  %s1141_s27 = sphi %s1198_s27, %s1464_s27   ;;  %s1137_s26 = sphi %s1196_s26, %s1463_s26   ;;  %s1133_s25 = sphi %s1194_s25, %s1462_s25   ;;  %s1129_s24 = sphi %s1192_s24, %s1461_s24  }
   0x7   : > { %p44_p0 = scmp.ne.s32.totalorder %s1133_s25, %s1129_s24  ;;  %p1445_p1 = scmp.eq.s32.totalorder %s1213_s28, 0 }
   0x8   : > { %p200_p3 = scmp.eq.s32.totalorder %s794_s29, 1  ;;  %p795_p5 = scmp.ge.s32.totalorder %s1141_s27, 1 }
   0x9   : > { %p1222_p4 = por %p1445_p1, %p44_p0  ;;  %p207_p7 = scmp.lt.s32.totalorder %s1141_s27, 3 }
   0xa   : > { %p1227_p6 = por %p200_p3, %p44_p0  ;;  %s1143_s10 = smov [#allocation5]  }
   0xb   : > { %s1448_s30 = scalar_select %p1222_p4, 1, 0 }
   0xc   : > { %s1449_s8 = scalar_select %p1227_p6, 1, 0 }
   0xd   : > { %p1232_p8 = pnand %p795_p5, %p207_p7  ;;  %s225_s11 = sshll.u32 %s1143_s10, 4  ;;  %s1236_s11 = int_to_ptr.vmem [resolvable:$true] %s225_s11 }
   0xe   : > { %s1144_s13 = smov [#allocation7]   ;;  %s985_s17 = scalar_lea.hbm %s1440_s3, 2048 }
   0xf   : > { %p879_p9 = pneg %p1232_p8  ;;  %s241_s14 = sshll.u32 %s1144_s13, 4  ;;  %s1247_s14 = int_to_ptr.vmem [resolvable:$true] %s241_s14 }
  0x10   : > { %p986_p12 = scmp.ne.s32.totalorder %s1440_s3, %s985_s17  ;;  %p992_p5 = scmp.lt.u32.totalorder %s985_s17, %s1440_s3 }
  0x11   : > { %p1243_p11 = pnand %p879_p9, %p1445_p1 }
  0x13   : > { %p987_p13 = pneg %p1243_p11 }
  0x15   : > { %p988_p0 = pnand %p987_p13, %p986_p12 }
  0x17   : > { %p989_p3 = pneg %p988_p0 }
  0x19   : > { %p994_p7 = pnand %p992_p5, %p989_p3 }
  0x1b   : > { %997 = shalt.err (!%p994_p7)
}
  0x1c   : > { %s998_s22 = scalar_lea.vmem %s1236_s11, 2048  ;;  %p1006_p2 = scmp.lt.s32.totalorder %s1236_s11, %s1236_s11 }
  0x1d   : > { %p999_p9 = scmp.ne.s32.totalorder %s1236_s11, %s998_s22  ;;  %p1007_p12 = scmp.lt.s32.totalorder %s998_s22, %s998_s22 }
  0x1f   : > { %p1001_p10 = pnand %p999_p9, %p987_p13  ;;  %p1008_p0 = por %p1007_p12, %p1006_p2 }
  0x21   : > { %p1002_p1 = pneg %p1001_p10 }
  0x23   : > { %p1009_p6 = pnand %p1008_p0, %p1002_p1 }
  0x25   : > { %1012 = shalt.err (!%p1009_p6)
}
  0x26   : > { %s1145_s23 = smov 128   ;;  %s1146_s29 = smov 8  }
  0x27   : > { %882 = dma.hbm_to_vmem [thread:$0]  (!%p1243_p11), %s1440_s3, 2048, %s1236_s11, [#allocation6], %s1145_s23, %s1145_s23, %s1146_s29  }
  0x28   : > { %s1013_s17 = scalar_lea.hbm %s1442_s5, 2048 }
  0x29   : > { %p1014_p2 = scmp.ne.s32.totalorder %s1442_s5, %s1013_s17  ;;  %p1020_p10 = scmp.lt.u32.totalorder %s1013_s17, %s1442_s5 }
  0x2b   : > { %p1016_p1 = pnand %p1014_p2, %p987_p13 }
  0x2d   : > { %p1017_p6 = pneg %p1016_p1 }
  0x2f   : > { %p1022_p3 = pnand %p1020_p10, %p1017_p6 }
  0x31   : > { %1025 = shalt.err (!%p1022_p3)
}
  0x32   : > { %s1026_s11 = scalar_lea.vmem %s1247_s14, 2048  ;;  %p1034_p12 = scmp.lt.s32.totalorder %s1247_s14, %s1247_s14 }
  0x33   : > { %p1027_p5 = scmp.ne.s32.totalorder %s1247_s14, %s1026_s11  ;;  %p1035_p0 = scmp.lt.s32.totalorder %s1026_s11, %s1026_s11 }
  0x35   : > { %p1029_p7 = pnand %p1027_p5, %p987_p13  ;;  %p1036_p2 = por %p1035_p0, %p1034_p12 }
  0x37   : > { %p1030_p9 = pneg %p1029_p7 }
  0x39   : > { %p1037_p1 = pnand %p1036_p2, %p1030_p9 }
  0x3b   : > { %1040 = shalt.err (!%p1037_p1)
}
  0x3c   : > { %s1147_s22 = smov 64   ;;  %s1148_s23 = smov 4  }
  0x3d   : > { %885 = dma.hbm_to_vmem [thread:$0]  (!%p1243_p11), %s1442_s5, 2048, %s1247_s14, [#allocation6], %s1147_s22, %s1147_s22, %s1148_s23  }
  0x3e   : > { %s1302_s13 = sadd.s32 1, %s1141_s27   ;;  %s31_s16 = sadd.s32 1, %s1137_s26 }
  0x3f   : > { %s28_s15 = ssub.s32 %s1141_s27, %s1302_s13  ;;  %p38_p6 = scmp.ne.s32.totalorder %s1137_s26, %s1133_s25 }
  0x40   : > { %p29_p13 = scmp.eq.s32.totalorder %s28_s15, 0  ;;  %p39_p10 = scmp.eq.s32.totalorder %s1141_s27, 0 }
  0x41   : > { %p1452_p5 = scmp.eq.s32.totalorder %s1213_s28, 1  ;;  %p896_p9 = scmp.lt.s32.totalorder %s1141_s27, 2 }
  0x42   : > { %s1311_s17 = scalar_select %p29_p13, %s1137_s26, %s31_s16  }
  0x43   : > { %p40_p3 = por %p39_p10, %p38_p6  ;;  %p1315_p7 = por %p1452_p5, %p38_p6 }
  0x44   : > { %s258_s12 = sand.u32 1, %s1137_s26   ;;  %s800_s14 = sshll.u32 %s1141_s27, 7 }
  0x45   : > { %s1453_s18 = scalar_select %p1315_p7, 1, 0 }
  0x46   : > { %s799_s19 = sshll.u32 %s258_s12, 3  ;;  %s1325_s11 = scalar_lea.hbm %s1437_s0, %s800_s14 }
  0x47   : > { %s262_s22 = scalar_lea.vmem [#allocation2], %s799_s19  ;;  %p1329_p11 = pnand %p896_p9, %p40_p3 }
  0x48   : > { %s269_s23 = sshll.u32 %s262_s22, 4  ;;  %s259_s10 = scalar_lea.sflag [#allocation3], %s258_s12  ;;  %s1327_s23 = int_to_ptr.vmem [resolvable:$true] %s269_s23 }
  0x49   : > { %s1041_s15 = scalar_lea.hbm %s1325_s11, 128  ;;  %p1043_p0 = pneg %p1329_p11 }
  0x4a   : > { %p1042_p12 = scmp.ne.s32.totalorder %s1325_s11, %s1041_s15  ;;  %s1046_s14 = scalar_lea.hbm %s1437_s0, 256 }
  0x4b   : > { %p1047_p13 = scmp.lt.u32.totalorder %s1325_s11, %s1437_s0  ;;  %p1048_p6 = scmp.lt.u32.totalorder %s1046_s14, %s1041_s15 }
  0x4c   : > { %p1044_p2 = pnand %p1043_p0, %p1042_p12  ;;  %p1050_p3 = scmp.lt.u32.totalorder %s1041_s15, %s1325_s11 }
  0x4d   : > { %p1049_p10 = por %p1048_p6, %p1047_p13 }
  0x4e   : > { %p1045_p1 = pneg %p1044_p2 }
  0x4f   : > { %p1051_p5 = por %p1050_p3, %p1049_p10 }
  0x51   : > { %p1052_p9 = pnand %p1051_p5, %p1045_p1 }
  0x53   : > { %1055 = shalt.err (!%p1052_p9)
}
  0x54   : > { %s1056_s12 = scalar_lea.vmem %s1327_s23, 128  ;;  %s1149_s22 = smov [#allocation2]  }
  0x55   : > { %p1057_p12 = scmp.ne.s32.totalorder %s1327_s23, %s1056_s12  ;;  %s1061_s16 = sshll.u32 %s1149_s22, 4  ;;  %s1062_s16 = int_to_ptr.vmem [resolvable:$false] %s1061_s16 }
  0x56   : > { %s1063_s19 = scalar_lea.vmem %s1062_s16, 256  ;;  %p1064_p4 = scmp.lt.s32.totalorder %s1327_s23, %s1062_s16 }
  0x57   : > { %p1059_p2 = pnand %p1057_p12, %p1043_p0  ;;  %p1065_p13 = scmp.lt.s32.totalorder %s1063_s19, %s1056_s12 }
  0x59   : > { %p1060_p7 = pneg %p1059_p2  ;;  %p1066_p6 = por %p1065_p13, %p1064_p4 }
  0x5b   : > { %p1067_p10 = pnand %p1066_p6, %p1060_p7 }
  0x5d   : > { %1070 = shalt.err (!%p1067_p10)
}
  0x5e   : > { %889 = dma.hbm_to_vmem [thread:$0]  (!%p1329_p11), %s1325_s11, 128, %s1327_s23, %s259_s10  }
  0x5f   : > { %278 = sbr.rel (%p1232_p8) target bundleno = 886 (0x376), region = 48  ;;  %s1361_s15 = sand.u32 (!%p1232_p8), 1, %s1133_s25  }
  0x60   : > { %s802_s14 = sshll.u32 (!%p1232_p8), %s1361_s15, 3  ;;  %s281_s20 = scalar_lea.sflag (!%p1232_p8), [#allocation3], %s1361_s15 }
  0x61   : > { %s284_s21 = scalar_lea.vmem (!%p1232_p8), [#allocation2], %s802_s14  ;;  %p1455_p4 = scmp.ne.s32.totalorder (!%p1232_p8), %s1448_s30, 0 }
  0x66   : > { %1116 = dma.done.wait (%p1455_p4), %s281_s20, 128  }
  0x67   : > { %1118 = vsyncadd (%p1455_p4), %s281_s20, 4294967168  ;;  %p1456_p7 = scmp.eq.s32.totalorder %s1213_s28, 0 }
  0x69   : > { %1120 = dma.done.wait (%p1456_p7), [#allocation6], 4096   ;;  %p1457_p8 = pmov %p1456_p7 }
  0x6a   : > { %v324_v0 = vld [vmem:[%s284_s21] sm:$0xff]  ;;  %v939_v1 = vld [vmem:[#allocation5 + $0x4] ss:$8 sps:$4 sm:$0xff]   ;;  %v941_v2 = vld [vmem:[#allocation5] ss:$8 sps:$4 sm:$0xff]   ;;  %v1150_v16 = vmov 0   ;;  %v372_v48 = vlaneseq }
  0x6b   : > { %1122 = vsyncadd (%p1457_p8), [#allocation6], 4294963200  ;;  %325 = vadd.xlane.f32.xlu0 %v324_v0  ;;  %v942_v3 = vld [vmem:[#allocation5 + $0x14] ss:$8 sps:$4 sm:$0xff]   ;;  %462 = vmatprep.subr.bf16.mxu0 %v939_v1  ;;  %v944_v4 = vld [vmem:[#allocation5 + $0x10] ss:$8 sps:$4 sm:$0xff]  }
  0x6c   : > { %463 = vmatpush1.bf16.msra.mxu0 %v941_v2  ;;  %v945_v5 = vld [vmem:[#allocation5 + $0x24] ss:$8 sps:$4 sm:$0xff]   ;;  %v947_v10 = vld [vmem:[#allocation5 + $0x20] ss:$8 sps:$4 sm:$0xff]   ;;  %v948_v11 = vld [vmem:[#allocation5 + $0x34] ss:$8 sps:$4 sm:$0xff]   ;;  %494 = vmatprep.mubr.bf16.mxu0 %v1150_v16 }
  0x6d   : > { %464 = vmatprep.subr.bf16.mxu0 %v942_v3  ;;  %v950_v12 = vld [vmem:[#allocation5 + $0x30] ss:$8 sps:$4 sm:$0xff]   ;;  %v951_v13 = vld [vmem:[#allocation5 + $0x44] ss:$8 sps:$4 sm:$0xff]   ;;  %v953_v14 = vld [vmem:[#allocation5 + $0x40] ss:$8 sps:$4 sm:$0xff]  }
  0x6e   : > { %v954_v15 = vld [vmem:[#allocation5 + $0x54] ss:$8 sps:$4 sm:$0xff]   ;;  %v956_v17 = vld [vmem:[#allocation5 + $0x50] ss:$8 sps:$4 sm:$0xff]   ;;  %v957_v18 = vld [vmem:[#allocation5 + $0x64] ss:$8 sps:$4 sm:$0xff]  }
  0x6f   : > { %v959_v19 = vld [vmem:[#allocation5 + $0x60] ss:$8 sps:$4 sm:$0xff]   ;;  %v960_v20 = vld [vmem:[#allocation5 + $0x74] ss:$8 sps:$4 sm:$0xff]   ;;  %v962_v21 = vld [vmem:[#allocation5 + $0x70] ss:$8 sps:$4 sm:$0xff]  }
  0x70   : > { %465 = vmatpush1.bf16.msra.mxu0 %v944_v4  ;;  %v963_v22 = vld [vmem:[#allocation7 + $0x40] sm:$0xff]   ;;  %v965_v24 = vld [vmem:[#allocation7 + $0x48] sm:$0xff]   ;;  %v806_v30 = vld [vmem:[%s1438_s1] ss:$0 sm:$0xff]  ;;  %v373_v49 = vshrl.u32 %v372_v48, 7  ;;  %s842_s16 = sshll.u32 %s1213_s28, 7 }
  0x71   : > { %466 = vmatprep.subr.bf16.mxu0 %v945_v5  ;;  %v964_v23 = vld [vmem:[#allocation7] sm:$0xff]   ;;  %845 = vmatprep.subr.bf16.mxu1 %v963_v22  ;;  %v966_v25 = vld [vmem:[#allocation7 + $0x8] sm:$0xff]   ;;  %v807_v32 = vld [vmem:[%s1439_s2] ss:$0 sm:$0xff]  ;;  %s322_s19 = scalar_lea.vmem [#allocation8], %s802_s14  ;;  %s1393_s9 = scalar_lea.hbm %s1444_s7, %s842_s16 }
  0x72   : > { %846 = vmatpush3.bf16.msra.mxu1 %v964_v23  ;;  %v967_v36 = vld [vmem:[#allocation7 + $0x50] sm:$0xff]   ;;  %v969_v38 = vld [vmem:[#allocation7 + $0x58] sm:$0xff]   ;;  %v971_v40 = vld [vmem:[#allocation7 + $0x60] sm:$0xff]   ;;  %v374_v50 = vsub.s32 0, %v373_v49  ;;  %v378_v52 = vsub.s32 1, %v373_v49  ;;  %s705_s20 = sshll.u32 %s322_s19, 4  ;;  %s1395_s20 = int_to_ptr.vmem [resolvable:$true] %s705_s20 }
  0x73   : > { %847 = vmatprep.subr.bf16.mxu1 %v965_v24  ;;  %v968_v37 = vld [vmem:[#allocation7 + $0x10] sm:$0xff]   ;;  %v970_v39 = vld [vmem:[#allocation7 + $0x18] sm:$0xff]   ;;  %v972_v41 = vld [vmem:[#allocation7 + $0x20] sm:$0xff]   ;;  %s692_s11 = scalar_lea.sflag [#allocation4], %s1361_s15  ;;  %s1071_s28 = scalar_lea.vmem %s1395_s20, 128 }
  0x74   : > { %467 = vmatpush1.bf16.msra.mxu0 %v947_v10  ;;  %v973_v42 = vld [vmem:[#allocation7 + $0x68] sm:$0xff]   ;;  %v975_v44 = vld [vmem:[#allocation7 + $0x70] sm:$0xff]   ;;  %v977_v46 = vld [vmem:[#allocation7 + $0x78] sm:$0xff]   ;;  %p1072_p11 = scmp.ne.s32.totalorder %s1395_s20, %s1071_s28  ;;  %p1458_p0 = scmp.ne.s32.totalorder %s1453_s18, 0 }
  0x75   : > { %468 = vmatprep.subr.bf16.mxu0 %v948_v11  ;;  %v974_v43 = vld [vmem:[#allocation7 + $0x28] sm:$0xff]   ;;  %v976_v45 = vld [vmem:[#allocation7 + $0x30] sm:$0xff]   ;;  %v978_v47 = vld [vmem:[#allocation7 + $0x38] sm:$0xff]   ;;  %s1151_s14 = smov [#allocation8]  }
  0x76   : > { %848 = vmatpush3.bf16.msra.mxu1 %v966_v25  ;;  %v370_v51 = vld [vmem:[%s1441_s4] sm:$0x3]  ;;  %p1073_p1 = pnand %p1072_p11, %p1458_p0  ;;  %s1075_s23 = sshll.u32 %s1151_s14, 4  ;;  %s1076_s23 = int_to_ptr.vmem [resolvable:$false] %s1075_s23 }
  0x77   : > { %849 = vmatprep.subr.bf16.mxu1 %v967_v36  ;;  %v375_v53 = vrot.slane %v370_v51, %v374_v50  ;;  %v379_v54 = vrot.slane %v370_v51, %v378_v52  ;;  %v824_v10 = vld [vmem:[%s1443_s6] ss:$0 sm:$0xff]  ;;  %s1077_s29 = scalar_lea.vmem %s1076_s23, 256  ;;  %p1078_p5 = scmp.lt.s32.totalorder %s1395_s20, %s1076_s23 }
  0x78   : > { %469 = vmatpush1.bf16.msra.mxu0 %v950_v12  ;;  %p1074_p3 = pneg %p1073_p1  ;;  %p1079_p9 = scmp.lt.s32.totalorder %s1077_s29, %s1071_s28 }
  0x79   : > { %470 = vmatprep.subr.bf16.mxu0 %v951_v13 }
  0x7a   : > { %850 = vmatpush3.bf16.msra.mxu1 %v968_v37  ;;  %p1080_p12 = por %p1079_p9, %p1078_p5 }
  0x7b   : > { %851 = vmatprep.subr.bf16.mxu1 %v969_v38 }
  0x7c   : > { %471 = vmatpush1.bf16.msra.mxu0 %v953_v14  ;;  %p1081_p2 = pnand %p1080_p12, %p1074_p3 }
  0x7d   : > { %472 = vmatprep.subr.bf16.mxu0 %v954_v15 }
  0x7e   : > { %852 = vmatpush3.bf16.msra.mxu1 %v970_v39 }
  0x7f   : > { %853 = vmatprep.subr.bf16.mxu1 %v971_v40 }
  0x80   : > { %473 = vmatpush1.bf16.msra.mxu0 %v956_v17 }
  0x81   : > { %474 = vmatprep.subr.bf16.mxu0 %v957_v18 }
  0x82   : > { %854 = vmatpush3.bf16.msra.mxu1 %v972_v41 }
  0x83   : > { %855 = vmatprep.subr.bf16.mxu1 %v973_v42 }
  0x84   : > { %475 = vmatpush1.bf16.msra.mxu0 %v959_v19 }
  0x85   : > { %476 = vmatprep.subr.bf16.mxu0 %v960_v20 }
  0x86   : > { %856 = vmatpush3.bf16.msra.mxu1 %v974_v43 }
  0x87   : > { %857 = vmatprep.subr.bf16.mxu1 %v975_v44 }
  0x88   : > { %477 = vmatpush1.bf16.msra.mxu0 %v962_v21 }
  0x8a   : > { %858 = vmatpush3.bf16.msra.mxu1 %v976_v45 }
  0x8b   : > { %859 = vmatprep.subr.bf16.mxu1 %v977_v46 }
  0x8e   : > { %860 = vmatpush3.bf16.msra.mxu1 %v978_v47 }
  0xf8   : > { %v326_v6 = vpop.xlane.xlu0 %325 }
  0xf9   : > { %v328_v7 = vmul.f32 0.0078125, %v326_v6 }
  0xfb   : > { %v329_v8 = vsub.f32 %v324_v0, %v328_v7 }
  0xfd   : > { %v330_v9 = vmul.f32 %v329_v8, %v329_v8 }
  0xff   : > { %331 = vadd.xlane.f32.xlu0 %v330_v9 }
 0x18c   : > { %v332_v26 = vpop.xlane.xlu0 %331 }
 0x18d   : > { %v333_v27 = vmul.f32 0.0078125, %v332_v26 }
 0x18f   : > { %v334_v28 = vadd.f32 1e-05, %v333_v27 }
 0x191   : > { %979 = vrsqrt.f32 %v334_v28 }
 0x19b   : > { %v980_v29 = vpop.eup %979 }
 0x19c   : > { %v336_v31 = vmul.f32 %v980_v29, %v329_v8 }
 0x19e   : > { %v344_v33 = vmul.f32 %v806_v30, %v336_v31 }
 0x1a0   : > { %v352_v34 = vadd.f32 %v807_v32, %v344_v33 }
 0x1a2   : > { %v353_v35 = vpack.c.bf16 %v352_v34, %v352_v34 }
 0x1a4   : > { %495 = vmatmul.mubr.bf16.vlgmr.msra.gmra.mrb[0].mxu0 %v353_v35 }
 0x277   : > { %v496_v55 = vpop.f32.mrb[0].mxu0 }
 0x278   : > { %v497_v56 = vadd.f32 %v496_v55, %v375_v53  ;;  %v498_v57 = vpop.f32.mrb[1].mxu0 }
 0x279   : > { %v499_v58 = vadd.f32 %v498_v57, %v379_v54  ;;  %v500_v59 = vpop.f32.mrb[2].mxu0 }
 0x27a   : > { %v505_v60 = vmul.f32 0.70710677, %v497_v56  ;;  %v501_v61 = vpop.f32.mrb[3].mxu0  ;;  %v503_v1 = vmul.f32 0.5, %v497_v56 }
 0x27b   : > { %v506_v62 = vmul.f32 0.70710677, %v499_v58  ;;  %v504_v3 = vmul.f32 0.5, %v499_v58 }
 0x27c   : > { %981 = verf.f32 %v505_v60 }
 0x27d   : > { %983 = verf.f32 %v506_v62 }
 0x286   : > { %v982_v63 = vpop.eup %981 }
 0x287   : > { %v984_v0 = vpop.eup %983  ;;  %v509_v2 = vadd.f32 1.0, %v982_v63 }
 0x288   : > { %v510_v4 = vadd.f32 1.0, %v984_v0 }
 0x289   : > { %v511_v5 = vmul.f32 %v509_v2, %v503_v1 }
 0x28a   : > { %v512_v6 = vmul.f32 %v510_v4, %v504_v3 }
 0x28b   : > { %v513_v8 = vpack.c.bf16 %v511_v5, %v511_v5 }
 0x28c   : > { %v514_v7 = vpack.c.bf16 %v512_v6, %v512_v6 }
 0x28e   : > { %682 = vmatprep.mubr.bf16.mxu1 %v514_v7 }
 0x28f   : > { %683 = vmatmul.mubr.bf16.vlgmr.msra.gmra.mrb[0].mxu1 %v513_v8 }
 0x362   : > { %v861_v9 = vpop.f32.mrb[0].mxu1 }
 0x363   : > { %v862_v11 = vpop.f32.mrb[1].mxu1 }
 0x364   : > { %v863_v12 = vadd.f32 %v862_v11, %v861_v9  ;;  %v864_v13 = vpop.f32.mrb[2].mxu1 }
 0x365   : > { %v865_v14 = vpop.f32.mrb[3].mxu1 }
 0x366   : > { %v685_v15 = vadd.f32 %v863_v12, %v824_v10 }
 0x368   : > { %690 = vst [vmem:[%s322_s19] sm:$0xff] %v685_v15 }
 0x369   : > { %1084 = shalt.err (!%p1081_p2)
}
 0x36a   : > { %s1085_s15 = scalar_lea.hbm %s1393_s9, 128  ;;  %s1089_s22 = scalar_lea.hbm %s1444_s7, 256 }
 0x36b   : > { %p1086_p13 = scmp.ne.s32.totalorder %s1393_s9, %s1085_s15  ;;  %p1090_p4 = scmp.lt.u32.totalorder %s1393_s9, %s1444_s7 }
 0x36c   : > { %p1091_p7 = scmp.lt.u32.totalorder %s1089_s22, %s1085_s15  ;;  %p1093_p11 = scmp.lt.u32.totalorder %s1085_s15, %s1393_s9 }
 0x36d   : > { %p1087_p6 = pnand %p1086_p13, %p1458_p0 }
 0x36e   : > { %p1092_p8 = por %p1091_p7, %p1090_p4 }
 0x36f   : > { %p1088_p10 = pneg %p1087_p6 }
 0x370   : > { %p1094_p1 = por %p1093_p11, %p1092_p8 }
 0x372   : > { %p1095_p3 = pnand %p1094_p1, %p1088_p10 }
 0x374   : > { %1098 = shalt.err (!%p1095_p3)
}
 0x375   : > { %877 = dma.vmem_to_hbm [thread:$0]  (%p1458_p0), %s1395_s20, 128, %s1393_s9, %s692_s11  }
 0x376 PF: > { %s717_s21 = sand.u32 1, %s1129_s24   ;;  %p1459_p5 = scmp.ne.s32.totalorder %s1449_s8, 0 }
 0x377   : > { %p1460_p9 = scmp.ge.s32.totalorder %s1141_s27, 2  ;;  %s718_s30 = scalar_lea.sflag [#allocation4], %s717_s21 }
 0x379   : > { %p891_p12 = pnand %p1460_p9, %p1459_p5 }
 0x37b   : > { %1124 = dma.done.wait (!%p891_p12), %s718_s30, 128  }
 0x37c   : > { %1126 = vsyncadd (!%p891_p12), %s718_s30, 4294967168  ;;  %p21_p2 = scmp.ge.s32.totalorder %s1302_s13, 4   ;;  %s1461_s24 = smov %s1133_s25 }
 0x37d   : > { %s1462_s25 = smov %s1137_s26  ;;  %s1463_s26 = smov %s1311_s17 }
 0x37e   : > { %s1464_s27 = smov %s1302_s13  ;;  %23 = sbr.rel (!%p21_p2) target bundleno = 6 (0x6), region = 101 }
 0x385   :  { %723 = vsyncpa [#allocation3], 1 }
 0x386   :  { %725 = vsyncpa [#allocation3 + $0x1], 1 }
 0x387   :  { %726 = vsyncpa [#allocation6], 1 }
 0x388   :  { %727 = vsyncpa [#allocation4], 1 }
 0x389   :  { %729 = vsyncpa [#allocation4 + $0x1], 1 }

</bundles_post_ra>
